<compile_context>
chip_gen: v6e
topology: v6e:2x2x1
jax: 0.10.0
libtpu: 0.0.40
codegen_flags: <defaults>
</compile_context>

<pallas_src>
import functools

import jax
import jax.numpy as jnp
from jax.experimental import pallas as pl
from jax.experimental.pallas import tpu as pltpu

A_PAD = 128  # lane-dense padded width for the action/logit dimension


def conciousness_kernel(ctx_ref, w1_ref, b1_ref, w2_ref, b2_ref, u_ref,
                        out_ref, *, num_actions):
    # ---- h1: Linear(context_size -> embedding_size) + tanh -----------------
    x = jnp.dot(ctx_ref[...], w1_ref[...], preferred_element_type=jnp.float32)
    x = jnp.tanh(x + b1_ref[...])                        # b1 is (1, E)

    # ---- h2: Linear(embedding_size -> A_PAD) --------------------------------
    # Padded weight columns are zero and their bias is -1e30, so padded lanes
    # carry ~zero softmax mass while the matmul N-dim and the store stay
    # 128-lane dense.
    logits = jnp.dot(x, w2_ref[...], preferred_element_type=jnp.float32)
    logits = logits + b2_ref[...]                        # (bt, A_PAD)

    # ---- softmax over the (padded) action dim -------------------------------
    m = jnp.max(logits, axis=-1, keepdims=True)
    e = jnp.exp(logits - m)
    probs = e * (1.0 / jnp.sum(e, axis=-1, keepdims=True))

    # ---- categorical sample: inverse CDF on one uniform per row -------------
    # CDF via an in-kernel upper-triangular mask (no extra HBM input / DMA).
    a_pad = probs.shape[-1]
    row = jax.lax.broadcasted_iota(jnp.int32, (a_pad, a_pad), 0)
    col = jax.lax.broadcasted_iota(jnp.int32, (a_pad, a_pad), 1)
    tri = (row <= col).astype(jnp.float32)
    cdf = jnp.dot(probs, tri, preferred_element_type=jnp.float32)
    u = u_ref[...]                                       # (bt, 1), in [0, 1)
    cnt = jnp.sum((cdf < u).astype(jnp.int32), axis=-1, keepdims=True)
    action = jnp.minimum(cnt, num_actions - 1).astype(jnp.float32)  # clamp

    # ---- single lane-dense output: probs in lanes [0, A), action in lane A --
    lane = jax.lax.broadcasted_iota(jnp.int32, probs.shape, 1)
    action_b = jnp.broadcast_to(action, probs.shape)
    out_ref[...] = jnp.where(lane == num_actions, action_b, probs)


@jax.jit
def conciousness_forward(context, w1, b1, w2, b2, key):
    """context: (B, C) f32; weights stored as (in, out); `key` should be a
    fresh jax.random key per call.  Returns (actions (B,) int32, probs (B, A))."""
    B, C = context.shape
    E = w1.shape[1]
    A = w2.shape[1]
    assert A < A_PAD

    # Pad layer-2 params to a lane-dense width (static shapes, fused under jit).
    w2p = jnp.zeros((E, A_PAD), jnp.float32).at[:, :A].set(w2)
    b2p = jnp.full((1, A_PAD), -1e30, jnp.float32).at[:, :A].set(b2.reshape(1, A))
    b1r = b1.reshape(1, E)

    # One uniform per row (only the random bits we actually use).
    u = jax.random.uniform(key, (B, 1), jnp.float32)

    # Tile the batch over a "parallel" grid axis.
    bt = 128 if B % 128 == 0 else B
    grid = (B // bt,)

    kernel = functools.partial(conciousness_kernel, num_actions=A)
    out = pl.pallas_call(
        kernel,
        out_shape=jax.ShapeDtypeStruct((B, A_PAD), jnp.float32),
        grid=grid,
        in_specs=[
            pl.BlockSpec((bt, C), lambda i: (i, 0)),
            pl.BlockSpec((C, E), lambda i: (0, 0)),
            pl.BlockSpec((1, E), lambda i: (0, 0)),
            pl.BlockSpec((E, A_PAD), lambda i: (0, 0)),
            pl.BlockSpec((1, A_PAD), lambda i: (0, 0)),
            pl.BlockSpec((bt, 1), lambda i: (i, 0)),
        ],
        out_specs=pl.BlockSpec((bt, A_PAD), lambda i: (i, 0)),
        compiler_params=pltpu.CompilerParams(
            dimension_semantics=("parallel",)),
    )(context, w1, b1r, w2p, b2p, u)

    # TODO(synk): rl_common.draw_categorical_sample returns a sample *object*
    # (with log-prob bookkeeping); here we return (action indices, probs).
    probs = out[:, :A]
    actions = out[:, A].astype(jnp.int32)
    return actions, probs


def init_params(key, context_size, embedding_size, num_actions):
    """Deterministic init mirroring nn.Linear (uniform +/- 1/sqrt(fan_in)),
    with weights already transposed to (in, out)."""
    k1, k2, k3, k4 = jax.random.split(key, 4)
    lim1 = 1.0 / jnp.sqrt(context_size)
    lim2 = 1.0 / jnp.sqrt(embedding_size)
    w1 = jax.random.uniform(k1, (context_size, embedding_size), jnp.float32,
                            -lim1, lim1)
    b1 = jax.random.uniform(k2, (embedding_size,), jnp.float32, -lim1, lim1)
    w2 = jax.random.uniform(k3, (embedding_size, num_actions), jnp.float32,
                            -lim2, lim2)
    b2 = jax.random.uniform(k4, (num_actions,), jnp.float32, -lim2, lim2)
    return w1, b1, w2, b2


if __name__ == "__main__":
    B = 8               # batch of contexts
    CONTEXT_SIZE = 16
    EMBEDDING_SIZE = 32
    NUM_ACTIONS = 2

    key = jax.random.PRNGKey(0)
    k_ctx, k_par, k_samp = jax.random.split(key, 3)
    context = jax.random.normal(k_ctx, (B, CONTEXT_SIZE), jnp.float32)
    w1, b1, w2, b2 = init_params(k_par, CONTEXT_SIZE, EMBEDDING_SIZE, NUM_ACTIONS)

    actions, probs = conciousness_forward(context, w1, b1, w2, b2, k_samp)
    jax.block_until_ready((actions, probs))

    # sanity: probs rows sum to 1, actions are in {0, ..., NUM_ACTIONS-1}
    assert probs.shape == (B, NUM_ACTIONS)
    assert actions.shape == (B,)
    assert bool(jnp.all(jnp.abs(jnp.sum(probs, axis=-1) - 1.0) < 1e-5))
    assert bool(jnp.all((actions >= 0) & (actions < NUM_ACTIONS)))

    print("KERNEL_OK")
</pallas_src>

<mosaic_0001>
module attributes {stable_mosaic.version = 11 : i64} {
  func.func @conciousness_kernel(%arg0: i32, %arg1: memref<8x16xf32, #tpu.memory_space<vmem>>, %arg2: memref<16x32xf32, #tpu.memory_space<vmem>>, %arg3: memref<1x32xf32, #tpu.memory_space<vmem>>, %arg4: memref<32x128xf32, #tpu.memory_space<vmem>>, %arg5: memref<1x128xf32, #tpu.memory_space<vmem>>, %arg6: memref<8x1xf32, #tpu.memory_space<vmem>>, %arg7: memref<8x128xf32, #tpu.memory_space<vmem>>) attributes {dimension_semantics = [#tpu.dimension_semantics<parallel>], iteration_bounds = array<i64: 1>, scalar_prefetch = 0 : i64, scratch_operands = 0 : i64, tpu.core_type = #tpu.core_type<tc>, window_params = [{transform_indices = @transform_0, window_bounds = array<i64: 8, 16>}, {pipeline_mode = #tpu.pipeline_mode<synchronous>, transform_indices = @transform_1, window_bounds = array<i64: 16, 32>}, {pipeline_mode = #tpu.pipeline_mode<synchronous>, transform_indices = @transform_2, window_bounds = array<i64: 1, 32>}, {pipeline_mode = #tpu.pipeline_mode<synchronous>, transform_indices = @transform_3, window_bounds = array<i64: 32, 128>}, {pipeline_mode = #tpu.pipeline_mode<synchronous>, transform_indices = @transform_4, window_bounds = array<i64: 1, 128>}, {transform_indices = @transform_5, window_bounds = array<i64: 8, 1>}, {transform_indices = @transform_6, window_bounds = array<i64: 8, 128>}]} {
    %c0 = arith.constant 0 : index
    %c0_0 = arith.constant 0 : index
    %0 = vector.load %arg1[%c0, %c0_0] : memref<8x16xf32, #tpu.memory_space<vmem>>, vector<8x16xf32>
    %c0_1 = arith.constant 0 : index
    %c0_2 = arith.constant 0 : index
    %1 = vector.load %arg2[%c0_1, %c0_2] : memref<16x32xf32, #tpu.memory_space<vmem>>, vector<16x32xf32>
    %cst = arith.constant dense<0.000000e+00> : vector<8x32xf32>
    %2 = tpu.matmul %0, %1, %cst {dimension_numbers = #tpu.dot_dimension_numbers<[1], [0], [0], [1], [0, 0, 1, 1], [], []>} : vector<8x16xf32>, vector<16x32xf32>, vector<8x32xf32> -> vector<8x32xf32>
    %c0_3 = arith.constant 0 : index
    %c0_4 = arith.constant 0 : index
    %3 = vector.load %arg3[%c0_3, %c0_4] : memref<1x32xf32, #tpu.memory_space<vmem>>, vector<1x32xf32>
    %4 = vector.broadcast %3 : vector<1x32xf32> to vector<8x32xf32>
    %5 = arith.addf %2, %4 : vector<8x32xf32>
    %6 = math.tanh %5 : vector<8x32xf32>
    %c0_5 = arith.constant 0 : index
    %c0_6 = arith.constant 0 : index
    %7 = vector.load %arg4[%c0_5, %c0_6] : memref<32x128xf32, #tpu.memory_space<vmem>>, vector<32x128xf32>
    %cst_7 = arith.constant dense<0.000000e+00> : vector<8x128xf32>
    %8 = tpu.matmul %6, %7, %cst_7 {dimension_numbers = #tpu.dot_dimension_numbers<[1], [0], [0], [1], [0, 0, 1, 1], [], []>} : vector<8x32xf32>, vector<32x128xf32>, vector<8x128xf32> -> vector<8x128xf32>
    %c0_8 = arith.constant 0 : index
    %c0_9 = arith.constant 0 : index
    %9 = vector.load %arg5[%c0_8, %c0_9] : memref<1x128xf32, #tpu.memory_space<vmem>>, vector<1x128xf32>
    %10 = vector.broadcast %9 : vector<1x128xf32> to vector<8x128xf32>
    %11 = arith.addf %8, %10 : vector<8x128xf32>
    %cst_10 = arith.constant dense<0xFF800000> : vector<8xf32>
    %12 = vector.multi_reduction <maximumf>, %11, %cst_10 [1] : vector<8x128xf32> to vector<8xf32>
    %13 = vector.shape_cast %12 : vector<8xf32> to vector<8x1xf32>
    %14 = vector.broadcast %13 : vector<8x1xf32> to vector<8x128xf32>
    %15 = arith.subf %11, %14 : vector<8x128xf32>
    %16 = math.exp %15 : vector<8x128xf32>
    %cst_11 = arith.constant dense<0.000000e+00> : vector<8xf32>
    %17 = vector.multi_reduction <add>, %16, %cst_11 [1] : vector<8x128xf32> to vector<8xf32>
    %18 = vector.shape_cast %17 : vector<8xf32> to vector<8x1xf32>
    %cst_12 = arith.constant 1.000000e+00 : f32
    %19 = vector.broadcast %cst_12 : f32 to vector<8x1xf32>
    %20 = arith.divf %19, %18 : vector<8x1xf32>
    %21 = vector.broadcast %20 : vector<8x1xf32> to vector<8x128xf32>
    %22 = arith.mulf %16, %21 : vector<8x128xf32>
    %23 = tpu.iota {dimensions = array<i32: 0>} : vector<128x128xi32>
    %24 = tpu.iota {dimensions = array<i32: 1>} : vector<128x128xi32>
    %25 = arith.cmpi sle, %23, %24 : vector<128x128xi32>
    %26 = arith.extui %25 : vector<128x128xi1> to vector<128x128xi32>
    %27 = arith.sitofp %26 : vector<128x128xi32> to vector<128x128xf32>
    %cst_13 = arith.constant dense<0.000000e+00> : vector<8x128xf32>
    %28 = tpu.matmul %22, %27, %cst_13 {dimension_numbers = #tpu.dot_dimension_numbers<[1], [0], [0], [1], [0, 0, 1, 1], [], []>} : vector<8x128xf32>, vector<128x128xf32>, vector<8x128xf32> -> vector<8x128xf32>
    %c0_14 = arith.constant 0 : index
    %c0_15 = arith.constant 0 : index
    %29 = vector.load %arg6[%c0_14, %c0_15] : memref<8x1xf32, #tpu.memory_space<vmem>>, vector<8x1xf32>
    %30 = vector.broadcast %29 : vector<8x1xf32> to vector<8x128xf32>
    %31 = arith.cmpf olt, %28, %30 : vector<8x128xf32>
    %32 = arith.extui %31 : vector<8x128xi1> to vector<8x128xi32>
    %cst_16 = arith.constant dense<0> : vector<8xi32>
    %33 = vector.multi_reduction <add>, %32, %cst_16 [1] : vector<8x128xi32> to vector<8xi32>
    %34 = vector.shape_cast %33 : vector<8xi32> to vector<8x1xi32>
    %c1_i32 = arith.constant 1 : i32
    %35 = vector.broadcast %c1_i32 : i32 to vector<8x1xi32>
    %36 = arith.minsi %34, %35 : vector<8x1xi32>
    %37 = arith.sitofp %36 : vector<8x1xi32> to vector<8x1xf32>
    %38 = tpu.iota {dimensions = array<i32: 1>} : vector<8x128xi32>
    %39 = vector.shape_cast %37 : vector<8x1xf32> to vector<8x1xf32>
    %40 = vector.broadcast %39 : vector<8x1xf32> to vector<8x128xf32>
    %c2_i32 = arith.constant 2 : i32
    %41 = vector.broadcast %c2_i32 : i32 to vector<8x128xi32>
    %42 = arith.cmpi eq, %38, %41 : vector<8x128xi32>
    %43 = arith.select %42, %40, %22 : vector<8x128xi1>, vector<8x128xf32>
    %c0_17 = arith.constant 0 : index
    %c0_18 = arith.constant 0 : index
    %44 = vector.load %arg7[%c0_17, %c0_18] : memref<8x128xf32, #tpu.memory_space<vmem>>, vector<8x128xf32>
    tpu.vector_store %arg7[%c0_17, %c0_18], %43 {strides = array<i32>} : memref<8x128xf32, #tpu.memory_space<vmem>>, vector<8x128xf32>,
    return
  }
  func.func @transform_0(%arg0: i32) -> (i32, i32) {
    %c0_i32 = arith.constant 0 : i32
    %c0_i32_0 = arith.constant 0 : i32
    return %arg0, %c0_i32 : i32, i32
  }
  func.func @transform_1(%arg0: i32) -> (i32, i32) {
    %c0_i32 = arith.constant 0 : i32
    %c0_i32_0 = arith.constant 0 : i32
    %c0_i32_1 = arith.constant 0 : i32
    return %c0_i32, %c0_i32_0 : i32, i32
  }
  func.func @transform_2(%arg0: i32) -> (i32, i32) {
    %c0_i32 = arith.constant 0 : i32
    %c0_i32_0 = arith.constant 0 : i32
    %c0_i32_1 = arith.constant 0 : i32
    return %c0_i32, %c0_i32_0 : i32, i32
  }
  func.func @transform_3(%arg0: i32) -> (i32, i32) {
    %c0_i32 = arith.constant 0 : i32
    %c0_i32_0 = arith.constant 0 : i32
    %c0_i32_1 = arith.constant 0 : i32
    return %c0_i32, %c0_i32_0 : i32, i32
  }
  func.func @transform_4(%arg0: i32) -> (i32, i32) {
    %c0_i32 = arith.constant 0 : i32
    %c0_i32_0 = arith.constant 0 : i32
    %c0_i32_1 = arith.constant 0 : i32
    return %c0_i32, %c0_i32_0 : i32, i32
  }
  func.func @transform_5(%arg0: i32) -> (i32, i32) {
    %c0_i32 = arith.constant 0 : i32
    %c0_i32_0 = arith.constant 0 : i32
    return %arg0, %c0_i32 : i32, i32
  }
  func.func @transform_6(%arg0: i32) -> (i32, i32) {
    %c0_i32 = arith.constant 0 : i32
    %c0_i32_0 = arith.constant 0 : i32
    return %arg0, %c0_i32 : i32, i32
  }
}

</mosaic_0001>

<bundles_post_ra>
// kernel: conciousness_forward.1
= control target key start
LH: loop header
LB: loop body
LE: loop exit
PB: predicated region body
PF: predicated region fallthrough
CT: control target
= control target key end

     0   :  { %v496_v0 = vmov 0.0   ;;  %vm497_vm0 = vmmov 0   ;;  %vm33_vm1 = vcmask 130048   ;;  %vm119_vm2 = vcmask 261120   ;;  %s630_s1 = inlined_call_operand.vmem [shape: f32[16,32], index: 1, kind: input, shape index: {}]   ;;  %s631_s0 = inlined_call_operand.vmem [shape: f32[8,16], index: 0, kind: input, shape index: {}]   ;;  %s632_s3 = inlined_call_operand.vmem [shape: f32[32,128], index: 3, kind: input, shape index: {}]   ;;  %s633_s2 = inlined_call_operand.vmem [shape: f32[1,32], index: 2, kind: input, shape index: {}]   ;;  %s634_s4 = inlined_call_operand.vmem [shape: f32[1,128], index: 4, kind: input, shape index: {}]   ;;  %s635_s5 = inlined_call_operand.vmem [shape: f32[8,1], index: 5, kind: input, shape index: {}]   ;;  %s636_s6 = inlined_call_operand.vmem [shape: f32[8,128], index: 6, kind: output, shape index: {}]  }
   0x1   :  { %431 = vmatprep.subr.mxu1 %v496_v0  ;;  %v25_v1 = vld [vmem:[%s630_s1 + $0x8] sm:$0xff]  ;;  %v24_v2 = vld [vmem:[%s630_s1] sm:$0xff]  ;;  %435 = vmatprep.mubr.msk.f32.mxu1 %vm497_vm0, %v496_v0  ;;  %v111_v4 = vld [vmem:[%s632_s3 + $0x18] sm:$0xff]  ;;  %v203_v17 = vlaneseq  ;;  %v498_v24 = vmov 1.0   ;;  %v499_v40 = vmov 0  }
   0x2   :  { %432 = vmatpush3.msra.mxu1 %v25_v1  ;;  %v23_v3 = vld [vmem:[%s631_s0] sm:$0xff]  ;;  %449 = vmatprep.subr.mxu0 %v496_v0  ;;  %v110_v5 = vld [vmem:[%s632_s3 + $0x10] sm:$0xff]  ;;  %v109_v6 = vld [vmem:[%s632_s3 + $0x8] sm:$0xff] }
   0x3   :  { %433 = vmatprep.subr.mxu1 %v496_v0  ;;  %481 = vmatprep.mubr.msk.f32.mxu0 %vm497_vm0, %v496_v0  ;;  %v108_v7 = vld [vmem:[%s632_s3] sm:$0xff]  ;;  %v572_v18 = vshrl.u32 %v203_v17, 7  ;;  %v574_v19 = vand.u32 127, %v203_v17 }
   0x4   :  { %434 = vmatpush3.msra.mxu1 %v24_v2  ;;  %v370_v8 = vld [vmem:[%s633_s2] ss:$0 sm:$0xff]  ;;  %488 = vset.pattern.permute.xlu1 %v499_v40 }
   0x5   :  { %436 = vmatmul.mubr.msk.f32.vlgmr.msra.gmra.mxu1 %vm33_vm1, %v23_v3  ;;  %438 = vmatprep.subr.mxu1 %v496_v0  ;;  %v372_v13 = vld [vmem:[%s634_s4] ss:$0 sm:$0xff]  ;;  %v219_v20 = vadd.s32 120, %v572_v18  ;;  %v218_v21 = vadd.s32 112, %v572_v18  ;;  %v217_v22 = vadd.s32 104, %v572_v18  ;;  %v216_v23 = vadd.s32 96, %v572_v18 }
   0x6   :  { %446 = vmatprep.mubr.msk.f32.mxu1 %vm497_vm0, %v496_v0  ;;  %439 = vmatpush3.msra.mxu1 %v111_v4  ;;  %v215_v25 = vadd.s32 88, %v572_v18  ;;  %v214_v26 = vadd.s32 80, %v572_v18  ;;  %v213_v27 = vadd.s32 72, %v572_v18  ;;  %v212_v28 = vadd.s32 64, %v572_v18  ;;  %v340_v41 = vld [vmem:[%s635_s5] sm:$0xff] }
   0x7   :  { %440 = vmatprep.subr.mxu1 %v496_v0  ;;  %vm237_vm3 = vcmp.le.s32.totalorder %v219_v20, %v574_v19  ;;  %vm236_vm4 = vcmp.le.s32.totalorder %v218_v21, %v574_v19  ;;  %vm235_vm5 = vcmp.le.s32.totalorder %v217_v22, %v574_v19  ;;  %vm234_vm6 = vcmp.le.s32.totalorder %v216_v23, %v574_v19 }
   0x8   :  { %441 = vmatpush3.msra.mxu1 %v110_v5  ;;  %450 = vmatpush3.msk.msra.mxu0 %vm237_vm3, %v498_v24  ;;  %vm233_vm7 = vcmp.le.s32.totalorder %v215_v25, %v574_v19  ;;  %vm232_vm8 = vcmp.le.s32.totalorder %v214_v26, %v574_v19  ;;  %vm231_vm9 = vcmp.le.s32.totalorder %v213_v27, %v574_v19  ;;  %v211_v33 = vadd.s32 56, %v572_v18 }
   0x9   :  { %442 = vmatprep.subr.mxu1 %v496_v0  ;;  %451 = vmatprep.subr.mxu0 %v496_v0  ;;  %vm230_vm10 = vcmp.le.s32.totalorder %v212_v28, %v574_v19  ;;  %v210_v34 = vadd.s32 48, %v572_v18  ;;  %v209_v35 = vadd.s32 40, %v572_v18  ;;  %v208_v36 = vadd.s32 32, %v572_v18 }
   0xa   :  { %443 = vmatpush3.msra.mxu1 %v109_v6  ;;  %452 = vmatpush3.msk.msra.mxu0 %vm236_vm4, %v498_v24  ;;  %vm229_vm11 = vcmp.le.s32.totalorder %v211_v33, %v574_v19  ;;  %v207_v37 = vadd.s32 24, %v572_v18  ;;  %v206_v38 = vadd.s32 16, %v572_v18  ;;  %v205_v39 = vadd.s32 8, %v572_v18 }
   0xb   :  { %444 = vmatprep.subr.mxu1 %v496_v0  ;;  %453 = vmatprep.subr.mxu0 %v496_v0  ;;  %vm228_vm12 = vcmp.le.s32.totalorder %v210_v34, %v574_v19  ;;  %vm227_vm13 = vcmp.le.s32.totalorder %v209_v35, %v574_v19  ;;  %vm226_vm14 = vcmp.le.s32.totalorder %v208_v36, %v574_v19 }
   0xc   :  { %445 = vmatpush3.msra.mxu1 %v108_v7  ;;  %454 = vmatpush3.msk.msra.mxu0 %vm235_vm5, %v498_v24  ;;  %vm225_vm15 = vcmp.le.s32.totalorder %v207_v37, %v574_v19  ;;  %vm224_vm0 = vcmp.le.s32.totalorder %v206_v38, %v574_v19  ;;  %vm223_vm1 = vcmp.le.s32.totalorder %v205_v39, %v574_v19  ;;  %vm363_vm5 = vcmp.eq.s32.totalorder %v574_v19, 2 }
   0xd   :  { %455 = vmatprep.subr.mxu0 %v496_v0  ;;  %489 = vset.pattern.permute.xlu0 %v499_v40 }
   0xe   :  { %456 = vmatpush3.msk.msra.mxu0 %vm234_vm6, %v498_v24  ;;  %343 = vperm.xlu1 %488, %v340_v41  }
   0xf   :  { %457 = vmatprep.subr.mxu0 %v496_v0 }
  0x10   :  { %458 = vmatpush3.msk.msra.mxu0 %vm233_vm7, %v498_v24 }
  0x11   :  { %459 = vmatprep.subr.mxu0 %v496_v0 }
  0x12   :  { %460 = vmatpush3.msk.msra.mxu0 %vm232_vm8, %v498_v24 }
  0x13   :  { %461 = vmatprep.subr.mxu0 %v496_v0 }
  0x14   :  { %462 = vmatpush3.msk.msra.mxu0 %vm231_vm9, %v498_v24 }
  0x15   :  { %463 = vmatprep.subr.mxu0 %v496_v0 }
  0x16   :  { %464 = vmatpush3.msk.msra.mxu0 %vm230_vm10, %v498_v24 }
  0x17   :  { %465 = vmatprep.subr.mxu0 %v496_v0 }
  0x18   :  { %466 = vmatpush3.msk.msra.mxu0 %vm229_vm11, %v498_v24 }
  0x19   :  { %467 = vmatprep.subr.mxu0 %v496_v0 }
  0x1a   :  { %468 = vmatpush3.msk.msra.mxu0 %vm228_vm12, %v498_v24 }
  0x1b   :  { %469 = vmatprep.subr.mxu0 %v496_v0 }
  0x1c   :  { %470 = vmatpush3.msk.msra.mxu0 %vm227_vm13, %v498_v24 }
  0x1d   :  { %471 = vmatprep.subr.mxu0 %v496_v0 }
  0x1e   :  { %472 = vmatpush3.msk.msra.mxu0 %vm226_vm14, %v498_v24 }
  0x1f   :  { %473 = vmatprep.subr.mxu0 %v496_v0 }
  0x20   :  { %474 = vmatpush3.msk.msra.mxu0 %vm225_vm15, %v498_v24 }
  0x21   :  { %475 = vmatprep.subr.mxu0 %v496_v0 }
  0x22   :  { %476 = vmatpush3.msk.msra.mxu0 %vm224_vm0, %v498_v24 }
  0x23   :  { %477 = vmatprep.subr.mxu0 %v496_v0 }
  0x24   :  { %478 = vmatpush3.msk.msra.mxu0 %vm223_vm1, %v498_v24 }
  0x25   :  { %479 = vmatprep.subr.mxu0 %v496_v0 }
  0x89   :  { %v344_v45 = vpop.permute.xlu1 %343 }
  0xc5   :  { %v103_v9 = vpop.f32.mrf.mxu1 }
  0xc6   :  { %v104_v10 = vadd.f32 %v370_v8, %v103_v9 }
  0xc7   :  { %v437_v11 = vpop.f32.mrf.mxu1 }
  0xc8   :  { %490 = vtanh.f32 %v104_v10 }
  0xd5   :  { %v491_v12 = vpop.eup %490 }
  0xd6   :  { %447 = vmatmul.mubr.msk.f32.vlgmr.msra.gmra.mxu1 %vm119_vm2, %v491_v12  ;;  %vm222_vm2 = vcmp.le.s32.totalorder %v572_v18, %v574_v19 }
  0xd7   :  { %480 = vmatpush3.msk.msra.mxu0 %vm222_vm2, %v498_v24 }
 0x196   :  { %v189_v14 = vpop.f32.mrf.mxu1 }
 0x197   :  { %v190_v15 = vadd.f32 %v372_v13, %v189_v14 }
 0x198   :  { %v448_v16 = vpop.f32.mrf.mxu1 }
 0x199   :  { %193 = vmax.xlane.f32.xlu0 %v190_v15 }
 0x222   :  { %v194_v29 = vpop.xlane.xlu0 %193 }
 0x223   :  { %v195_v30 = vsub.f32 %v190_v15, %v194_v29 }
 0x225   :  { %v196_v31 = vmul.f32 1.442695, %v195_v30 }
 0x227   :  { %492 = vpow2.f32 %v196_v31 }
 0x234   :  { %v493_v32 = vpop.eup %492 }
 0x235   :  { %198 = vadd.xlane.f32.xlu0 %v493_v32 }
 0x2be   :  { %v199_v42 = vpop.xlane.xlu0 %198 }
 0x2bf   :  { %494 = vrcp.f32 %v199_v42 }
 0x2cc   :  { %v495_v43 = vpop.eup %494 }
 0x2cd   :  { %v202_v44 = vmul.f32 %v495_v43, %v493_v32 }
 0x2cf   :  { %482 = vmatmul.mubr.f32.vlgmr.msra.gmra.mxu0 %v202_v44 }
 0x38f   :  { %v336_v46 = vpop.f32.mrf.mxu0 }
 0x390   :  { %vm346_vm3 = vcmp.lt.f32.partialorder %v336_v46, %v344_v45 }
 0x391   :  { %v347_v47 = vsel %vm346_vm3, 1, %v499_v40  ;;  %v483_v48 = vpop.f32.mrf.mxu0 }
 0x392   :  { %v349_v49 = vshrl.u32 %v347_v47, 16  ;;  %v348_v50 = vand.u32 65535, %v347_v47 }
 0x394   :  { %v351_v51 = vcvt.s32.f32 %v349_v49  ;;  %v350_v52 = vcvt.s32.f32 %v348_v50 }
 0x396   :  { %354 = vadd.xlane.f32.xlu1 %v351_v51  ;;  %352 = vadd.xlane.f32.xlu0 %v350_v52 }
 0x41f   :  { %v355_v53 = vpop.xlane.xlu1 %354  ;;  %v353_v54 = vpop.xlane.xlu0 %352 }
 0x420   :  { %v357_v55 = vcvt.f32.s32 %v355_v53  ;;  %v356_v57 = vcvt.f32.s32 %v353_v54 }
 0x422   :  { %v358_v56 = vshll.u32 %v357_v55, 16 }
 0x424   :  { %v359_v58 = vadd.s32 %v358_v56, %v356_v57 }
 0x426   :  { %vm360_vm4 = vcmp.lt.s32.totalorder %v359_v58, 1 }
 0x427   :  { %v361_v59 = vsel %vm360_vm4, %v359_v58, 1 }
 0x428   :  { %v362_v60 = vcvt.s32.f32 %v361_v59 }
 0x42a   :  { %v364_v61 = vsel %vm363_vm5, %v362_v60, %v202_v44 }
 0x42b   :  { %365 = vst [vmem:[%s636_s6] sm:$0xff] %v364_v61 }

</bundles_post_ra>
